<compile_context>
chip_gen: v7x
topology: tpu7x:2x2x1
jax: 0.10.0
libtpu: 0.0.40
codegen_flags: <defaults>
</compile_context>

<pallas_src>
import numpy as np
import jax
import jax.numpy as jnp
from jax.experimental import pallas as pl
from jax.experimental.pallas import tpu as pltpu  # noqa: F401  (kept for parity/extension)


def _exit_block_kernel(x_ref, w1_ref, b1_ref, w2_ref, b2_ref, o_ref):
    # x_ref : (B, K)   flattened input, K = C*L
    # w1_ref: (K, Hd)  pool-folded, pre-transposed first Linear
    # b1_ref: (1, Hd)
    # w2_ref: (Hd, O)  pre-transposed second Linear
    # b2_ref: (1, O)
    # o_ref : (B, O)
    h = jnp.dot(x_ref[...], w1_ref[...],
                preferred_element_type=jnp.float32) + b1_ref[...]
    h = jnp.maximum(h, 0.0)                                           # ReLU
    o_ref[...] = (jnp.dot(h, w2_ref[...],
                          preferred_element_type=jnp.float32) + b2_ref[...])


def prepare_params(w1, b1, w2, b2, seq_len):
    """One-time parameter prep: fold AdaptiveAvgPool1d(1)+Flatten into W1 and
    pre-transpose both Linear weights (PyTorch stores them as (out, in))."""
    L = seq_len
    # pooled[b, c] = mean_l x[b, c, l]  =>  pooled @ W1.T == x.reshape(B, C*L) @ Weff
    w_eff = jnp.repeat(w1.T, L, axis=0) / float(L)          # (C*L, Hd)
    return {
        "w1t": w_eff,                                        # (C*L, Hd)
        "b1": b1[None, :],                                   # (1, Hd)
        "w2t": w2.T,                                         # (Hd, O)
        "b2": b2[None, :],                                   # (1, O)
    }


def exit_block(x, prepared):
    """x: (B, C, L) float32, matching nn.AdaptiveAvgPool1d's (N, C, L) input."""
    B, C, L = x.shape
    K = C * L
    Hd = prepared["w1t"].shape[1]
    O = prepared["w2t"].shape[1]
    x_flat = x.reshape(B, K)   # contiguous reshape; folds into the input DMA

    # Single fused kernel, one grid step: the whole problem (<40 KiB) fits VMEM
    # on every generation (incl. v7x's 64 MiB), so no tiling is needed.
    # NOTE: if B grows in production, tile over B with a (>=8)-row block and a
    # "parallel" grid axis instead of one full-(B, K) block.
    return pl.pallas_call(
        _exit_block_kernel,
        out_shape=jax.ShapeDtypeStruct((B, O), jnp.float32),
        grid=(1,),
        in_specs=[
            pl.BlockSpec((B, K), lambda i: (0, 0)),
            pl.BlockSpec((K, Hd), lambda i: (0, 0)),
            pl.BlockSpec((1, Hd), lambda i: (0, 0)),
            pl.BlockSpec((Hd, O), lambda i: (0, 0)),
            pl.BlockSpec((1, O), lambda i: (0, 0)),
        ],
        out_specs=pl.BlockSpec((B, O), lambda i: (0, 0)),
    )(x_flat, prepared["w1t"], prepared["b1"], prepared["w2t"], prepared["b2"])


def exit_block_ref(x, w1, b1, w2, b2):
    """Pure-JAX reference matching the PyTorch module exactly."""
    pooled = jnp.mean(x, axis=-1)                  # AdaptiveAvgPool1d(1) + Flatten(1)
    h = jnp.maximum(pooled @ w1.T + b1, 0.0)
    return h @ w2.T + b2


if __name__ == "__main__":
    # ExitBlock(in_channels=4, hidden_sizes=32, out_channels=10); x: (B, C, L)
    B, C, L = 2, 4, 16
    hidden_sizes, out_channels = 32, 10

    key = jax.random.PRNGKey(0)
    kx, kw1, kb1, kw2, kb2 = jax.random.split(key, 5)

    x = jax.random.normal(kx, (B, C, L), dtype=jnp.float32)
    # Linear weights in PyTorch convention (out_features, in_features)
    w1 = 0.1 * jax.random.normal(kw1, (hidden_sizes, C), dtype=jnp.float32)
    b1 = 0.1 * jax.random.normal(kb1, (hidden_sizes,), dtype=jnp.float32)
    w2 = 0.1 * jax.random.normal(kw2, (out_channels, hidden_sizes), dtype=jnp.float32)
    b2 = 0.1 * jax.random.normal(kb2, (out_channels,), dtype=jnp.float32)

    prepared = prepare_params(w1, b1, w2, b2, seq_len=L)

    out = exit_block(x, prepared)
    out = jax.block_until_ready(out)

    ref = exit_block_ref(x, w1, b1, w2, b2)
    np.testing.assert_allclose(np.asarray(out), np.asarray(ref), rtol=1e-5, atol=1e-5)

    print("KERNEL_OK")
</pallas_src>

<mosaic_0001>
module attributes {stable_mosaic.version = 11 : i64} {
  func.func @_exit_block_kernel(%arg0: i32, %arg1: memref<2x64xf32, #tpu.memory_space<vmem>>, %arg2: memref<64x32xf32, #tpu.memory_space<vmem>>, %arg3: memref<1x32xf32, #tpu.memory_space<vmem>>, %arg4: memref<32x10xf32, #tpu.memory_space<vmem>>, %arg5: memref<1x10xf32, #tpu.memory_space<vmem>>, %arg6: memref<2x10xf32, #tpu.memory_space<vmem>>) attributes {dimension_semantics = [#tpu.dimension_semantics<arbitrary>], iteration_bounds = array<i64: 1>, scalar_prefetch = 0 : i64, scratch_operands = 0 : i64, tpu.core_type = #tpu.core_type<tc>, window_params = [{pipeline_mode = #tpu.pipeline_mode<synchronous>, transform_indices = @transform_0, window_bounds = array<i64: 2, 64>}, {pipeline_mode = #tpu.pipeline_mode<synchronous>, transform_indices = @transform_1, window_bounds = array<i64: 64, 32>}, {pipeline_mode = #tpu.pipeline_mode<synchronous>, transform_indices = @transform_2, window_bounds = array<i64: 1, 32>}, {pipeline_mode = #tpu.pipeline_mode<synchronous>, transform_indices = @transform_3, window_bounds = array<i64: 32, 10>}, {pipeline_mode = #tpu.pipeline_mode<synchronous>, transform_indices = @transform_4, window_bounds = array<i64: 1, 10>}, {pipeline_mode = #tpu.pipeline_mode<synchronous>, transform_indices = @transform_5, window_bounds = array<i64: 2, 10>}]} {
    %c0 = arith.constant 0 : index
    %c0_0 = arith.constant 0 : index
    %0 = vector.load %arg1[%c0, %c0_0] : memref<2x64xf32, #tpu.memory_space<vmem>>, vector<2x64xf32>
    %c0_1 = arith.constant 0 : index
    %c0_2 = arith.constant 0 : index
    %1 = vector.load %arg2[%c0_1, %c0_2] : memref<64x32xf32, #tpu.memory_space<vmem>>, vector<64x32xf32>
    %cst = arith.constant dense<0.000000e+00> : vector<2x32xf32>
    %2 = tpu.matmul %0, %1, %cst {dimension_numbers = #tpu.dot_dimension_numbers<[1], [0], [0], [1], [0, 0, 1, 1], [], []>} : vector<2x64xf32>, vector<64x32xf32>, vector<2x32xf32> -> vector<2x32xf32>
    %c0_3 = arith.constant 0 : index
    %c0_4 = arith.constant 0 : index
    %3 = vector.load %arg3[%c0_3, %c0_4] : memref<1x32xf32, #tpu.memory_space<vmem>>, vector<1x32xf32>
    %4 = vector.broadcast %3 : vector<1x32xf32> to vector<2x32xf32>
    %5 = arith.addf %2, %4 : vector<2x32xf32>
    %cst_5 = arith.constant 0.000000e+00 : f32
    %6 = vector.broadcast %cst_5 : f32 to vector<2x32xf32>
    %7 = arith.maximumf %5, %6 : vector<2x32xf32>
    %c0_6 = arith.constant 0 : index
    %c0_7 = arith.constant 0 : index
    %8 = vector.load %arg4[%c0_6, %c0_7] : memref<32x10xf32, #tpu.memory_space<vmem>>, vector<32x10xf32>
    %cst_8 = arith.constant dense<0.000000e+00> : vector<2x10xf32>
    %9 = tpu.matmul %7, %8, %cst_8 {dimension_numbers = #tpu.dot_dimension_numbers<[1], [0], [0], [1], [0, 0, 1, 1], [], []>} : vector<2x32xf32>, vector<32x10xf32>, vector<2x10xf32> -> vector<2x10xf32>
    %c0_9 = arith.constant 0 : index
    %c0_10 = arith.constant 0 : index
    %10 = vector.load %arg5[%c0_9, %c0_10] : memref<1x10xf32, #tpu.memory_space<vmem>>, vector<1x10xf32>
    %11 = vector.broadcast %10 : vector<1x10xf32> to vector<2x10xf32>
    %12 = arith.addf %9, %11 : vector<2x10xf32>
    %c0_11 = arith.constant 0 : index
    %c0_12 = arith.constant 0 : index
    %13 = vector.load %arg6[%c0_11, %c0_12] : memref<2x10xf32, #tpu.memory_space<vmem>>, vector<2x10xf32>
    tpu.vector_store %arg6[%c0_11, %c0_12], %12 {strides = array<i32>} : memref<2x10xf32, #tpu.memory_space<vmem>>, vector<2x10xf32>,
    return
  }
  func.func @transform_0(%arg0: i32) -> (i32, i32) {
    %c0_i32 = arith.constant 0 : i32
    %c0_i32_0 = arith.constant 0 : i32
    %c0_i32_1 = arith.constant 0 : i32
    return %c0_i32, %c0_i32_0 : i32, i32
  }
  func.func @transform_1(%arg0: i32) -> (i32, i32) {
    %c0_i32 = arith.constant 0 : i32
    %c0_i32_0 = arith.constant 0 : i32
    %c0_i32_1 = arith.constant 0 : i32
    return %c0_i32, %c0_i32_0 : i32, i32
  }
  func.func @transform_2(%arg0: i32) -> (i32, i32) {
    %c0_i32 = arith.constant 0 : i32
    %c0_i32_0 = arith.constant 0 : i32
    %c0_i32_1 = arith.constant 0 : i32
    return %c0_i32, %c0_i32_0 : i32, i32
  }
  func.func @transform_3(%arg0: i32) -> (i32, i32) {
    %c0_i32 = arith.constant 0 : i32
    %c0_i32_0 = arith.constant 0 : i32
    %c0_i32_1 = arith.constant 0 : i32
    return %c0_i32, %c0_i32_0 : i32, i32
  }
  func.func @transform_4(%arg0: i32) -> (i32, i32) {
    %c0_i32 = arith.constant 0 : i32
    %c0_i32_0 = arith.constant 0 : i32
    %c0_i32_1 = arith.constant 0 : i32
    return %c0_i32, %c0_i32_0 : i32, i32
  }
  func.func @transform_5(%arg0: i32) -> (i32, i32) {
    %c0_i32 = arith.constant 0 : i32
    %c0_i32_0 = arith.constant 0 : i32
    %c0_i32_1 = arith.constant 0 : i32
    return %c0_i32, %c0_i32_0 : i32, i32
  }
}

</mosaic_0001>

<bundles_post_ra>
// kernel: tpu_custom_call.1
= control target key start
LH: loop header
LB: loop body
LE: loop exit
PB: predicated region body
PF: predicated region fallthrough
CT: control target
= control target key end

     0   :  { %v307_v3 = vmov 0.0|0.0   ;;  %vm308_vm0 = vmmov 0   ;;  %v309_v6 = vmov 0.0   ;;  %s398_s0 = inlined_call_operand.vmem [shape: f32[2,64], index: 0, kind: input, shape index: {}]   ;;  %s399_s1 = inlined_call_operand.vmem [shape: f32[64,32], index: 1, kind: input, shape index: {}]   ;;  %s400_s2 = inlined_call_operand.vmem [shape: f32[1,32], index: 2, kind: input, shape index: {}]   ;;  %s401_s3 = inlined_call_operand.vmem [shape: f32[32,10], index: 3, kind: input, shape index: {}]   ;;  %s402_s4 = inlined_call_operand.vmem [shape: f32[1,10], index: 4, kind: input, shape index: {}]   ;;  %s403_s5 = inlined_call_operand.hbm [shape: f32[2,10], index: 5, kind: output, shape index: {}]  }
   0x1   :  { %v22_v0 = vld [vmem:[%s399_s1] sm:$0xff]  ;;  %v23_v1 = vld [vmem:[%s399_s1 + $0x8] sm:$0xff]  ;;  %v24_v2 = vld [vmem:[%s399_s1 + $0x10] sm:$0xff]  ;;  %261 = vmatprep.subr.bf16.mxu0 %v307_v3  ;;  %247 = vmatprep.mubr.msk.f32.mxu0 %vm308_vm0, %v309_v6 }
   0x2   :  { %v262_v4 = vpack.c.bf16 %v23_v1, %v22_v0  ;;  %v25_v5 = vld [vmem:[%s399_s1 + $0x18] sm:$0xff]  ;;  %273 = vmatprep.subr.bf16.mxu1 %v307_v3  ;;  %258 = vmatprep.mubr.msk.f32.mxu1 %vm308_vm0, %v309_v6  ;;  %v112_v8 = vld [vmem:[%s401_s3] sm:$0xff]  ;;  %v113_v9 = vld [vmem:[%s401_s3 + $0x8] sm:$0xff] }
   0x3   :  { %v265_v7 = vpack.c.bf16 %v25_v5, %v24_v2  ;;  %v26_v10 = vld [vmem:[%s399_s1 + $0x20] sm:$0xff]  ;;  %v27_v11 = vld [vmem:[%s399_s1 + $0x28] sm:$0xff]  ;;  %v274_v12 = vpack.c.bf16 %v113_v9, %v112_v8 }
   0x4   :  { %263 = vmatpush3.bf16.msra.mxu0 %v262_v4 }
   0x5   :  { %264 = vmatprep.subr.bf16.mxu0 %v307_v3 }
   0x6   :  { %10 = vsyncpa [#allocation3], 0  ;;  %275 = vmatpush3.bf16.msra.mxu1 %v274_v12  ;;  %v268_v13 = vpack.c.bf16 %v27_v11, %v26_v10  ;;  %v28_v14 = vld [vmem:[%s399_s1 + $0x30] sm:$0xff]  ;;  %v29_v15 = vld [vmem:[%s399_s1 + $0x38] sm:$0xff]  ;;  %vm37_vm1 = vcmask 523264   ;;  %vm123_vm2 = vcmask 261120  }
   0x7   :  { %276 = vmatprep.subr.bf16.mxu1 %v307_v3  ;;  %v271_v16 = vpack.c.bf16 %v29_v15, %v28_v14  ;;  %v21_v17 = vld [vmem:[%s398_s0] sm:$0x3]  ;;  %v114_v18 = vld [vmem:[%s401_s3 + $0x10] sm:$0xff]  ;;  %v115_v19 = vld [vmem:[%s401_s3 + $0x18] sm:$0xff]  ;;  %s310_s21 = smov [#allocation2]   ;;  %vm197_vm3 = vcmask 74752  }
   0x8   :  { %266 = vmatpush3.bf16.msra.mxu0 %v265_v7  ;;  %v277_v20 = vpack.c.bf16 %v115_v19, %v114_v18  ;;  %v213_v21 = vld [vmem:[%s400_s2] ss:$0 sm:$0xff]  ;;  %s205_s22 = sshll.u32 %s310_s21, 4  ;;  %s206_s22 = int_to_ptr.vmem [resolvable:$true] %s205_s22 }
   0x9   :  { %267 = vmatprep.subr.bf16.mxu0 %v307_v3  ;;  %v215_v26 = vld [vmem:[%s402_s4] ss:$0 sm:$0xff]  ;;  %s283_s3 = scalar_lea.vmem %s206_s22, 32  ;;  %p288_p1 = scmp.lt.s32.totalorder %s206_s22, %s206_s22 }
   0xa   :  { %278 = vmatpush3.bf16.msra.mxu1 %v277_v20  ;;  %p284_p0 = scmp.ne.s32.totalorder %s206_s22, %s283_s3  ;;  %p289_p2 = scmp.lt.s32.totalorder %s283_s3, %s283_s3 }
   0xc   :  { %269 = vmatpush3.bf16.msra.mxu0 %v268_v13  ;;  %p290_p3 = por %p289_p2, %p288_p1 }
   0xd   :  { %270 = vmatprep.subr.bf16.mxu0 %v307_v3 }
   0xe   :  { %p291_p4 = pnand %p290_p3, %p284_p0 }
  0x10   :  { %272 = vmatpush3.bf16.msra.mxu0 %v271_v16 }
  0x13   :  { %248 = vmatmul.mubr.msk.f32.vlgmr.msra.gmra.mrb[0].mxu0 %vm37_vm1, %v21_v17 }
  0xe6   :  { %v107_v22 = vpop.f32.mrb[0].mxu0 }
  0xe7   :  { %v108_v23 = vadd.f32 %v213_v21, %v107_v22  ;;  %v249_v24 = vpop.f32.mrb[1].mxu0 }
  0xe9   :  { %v111_v25 = vmax.f32 %v108_v23, 0.0 }
  0xeb   :  { %259 = vmatmul.mubr.msk.f32.vlgmr.msra.gmra.mrb[0].mxu1 %vm123_vm2, %v111_v25 }
 0x1be   :  { %v193_v27 = vpop.f32.mrb[0].mxu1 }
 0x1bf   :  { %v194_v28 = vadd.f32 %v215_v26, %v193_v27  ;;  %v260_v29 = vpop.f32.mrb[1].mxu1 }
 0x1c1   :  { %198 = vst.msk [vmem:[#allocation2] sm:$0x3] %vm197_vm3, %v194_v28 }
 0x1c2   :  { %294 = shalt.err (!%p291_p4)
}
 0x1c3   :  { %s295_s24 = scalar_lea.hbm %s403_s5, 32 }
 0x1c4   :  { %p296_p5 = scmp.ne.s32.totalorder %s403_s5, %s295_s24  ;;  %p299_p6 = scmp.lt.u32.totalorder %s295_s24, %s403_s5 }
 0x1c6   :  { %p301_p7 = pnand %p299_p6, %p296_p5 }
 0x1c8   :  { %304 = shalt.err (!%p301_p7)
}
 0x1c9   :  { %208 = dma.vmem_to_hbm [thread:$0]  %s206_s22, 32, %s403_s5, [#allocation3]  }
 0x1ca   :  { %305 = dma.done.wait [#allocation3], 32  }
 0x1cb   :  { %306 = vsyncadd [#allocation3], 4294967264 }
 0x1cc   :  { %212 = vsyncpa [#allocation3], 1 }

</bundles_post_ra>
